<compile_context>
chip_gen: v7x
topology: tpu7x:2x2x1
jax: 0.10.0
libtpu: 0.0.40
codegen_flags: <defaults>
</compile_context>

<pallas_src>
import jax
import jax.numpy as jnp
from jax import lax
from jax.experimental import pallas as pl
from jax.experimental.pallas import tpu as pltpu

_MIB = 1024 * 1024


def _self_output_kernel(x_ref, wt_ref, b_ref, o_ref):
    # x_ref : (tm, H)  token tile
    # wt_ref: (H, H)   pre-transposed weight W^T (in_features, out_features)
    # b_ref : (1, H)   bias, broadcast over rows
    # o_ref : (tm, H)
    y = lax.dot_general(
        x_ref[...], wt_ref[...],
        dimension_numbers=(((1,), (0,)), ((), ())),   # (m,k)x(k,n): x @ W^T
        preferred_element_type=jnp.float32,
    )
    y = y + b_ref[...].astype(jnp.float32)
    # TODO(synk): nn.Dropout is identity in eval mode; training-mode dropout
    # (pltpu.prng_random_bits masking) is intentionally omitted.
    o_ref[...] = y.astype(o_ref.dtype)


def _vmem_budget_bytes():
    """Generation-aware tile budget + physical VMEM capacity (0 if unknown)."""
    try:
        cap = int(pltpu.get_tpu_info().vmem_capacity_bytes)
    except Exception:
        cap = 0
    if cap >= 96 * _MIB:          # v5e / v6e: 128 MiB physical VMEM
        return 48 * _MIB, cap
    if cap > 0:                   # v7x-class: 64 MiB physical -> leave headroom
        return 24 * _MIB, cap
    return 24 * _MIB, 0           # unknown: be conservative


def _choose_tm(M, H, x_item, out_item, w_item, budget):
    """Largest token tile fitting budget = W (single-buffered) + bias +
    double-buffered x tile + double-buffered out tile; prefers an even grid."""
    if M <= 256:
        return M                  # single full block (equals full dim -> legal)
    fixed = H * H * w_item + H * w_item          # resident W^T + bias (1 buffer each)
    per_row = 2 * H * (x_item + out_item)        # double-buffered x + out rows
    avail = max(budget - fixed, 256 * per_row)
    tm = int(avail // per_row)
    tm = max(256, (tm // 256) * 256)             # MXU-friendly multiple of 256
    tm = min(tm, 2048, M)                        # diminishing returns past ~2K rows
    # Prefer an even grid so v7x megacore shards the token axis evenly
    # (no effect on single-TensorCore v5e/v6e).
    if M >= 512:
        g = -(-M // tm)
        if g % 2 == 1:
            g += 1
            tm = -(-M // g)
            tm = min(M, -(-tm // 32) * 32)       # keep second-minor dim tile-aligned
    return tm


def vit_self_output(hidden_states, input_tensor, weight, bias, *, tm=None,
                    compute_dtype=None):
    """hidden_states, input_tensor: (B, S, H); weight: (H, H) [out, in]; bias: (H,).

    compute_dtype: optional (e.g. jnp.bfloat16) opt-in lower-precision compute
    (f32 accumulation kept); changes numerics vs the f32 reference.
    """
    del input_tensor  # unused by the reference forward
    B, S, H = hidden_states.shape
    M = B * S
    out_dtype = hidden_states.dtype

    # One-time wrapper-side prep: transpose W so the kernel never transposes it.
    x = hidden_states.reshape(M, H)
    w_t = weight.T
    b = bias.reshape(1, H)
    if compute_dtype is not None:
        x = x.astype(compute_dtype)
        w_t = w_t.astype(compute_dtype)
        b = b.astype(compute_dtype)

    x_item = jnp.dtype(x.dtype).itemsize
    w_item = jnp.dtype(w_t.dtype).itemsize
    out_item = jnp.dtype(out_dtype).itemsize

    budget, cap = _vmem_budget_bytes()
    if tm is None:
        tm = _choose_tm(M, H, x_item, out_item, w_item, budget)
    tm = min(tm, M)
    grid_m = pl.cdiv(M, tm)

    def build(single_buffer_invariants):
        w_bufs = 1 if single_buffer_invariants else 2
        planned = (w_bufs * (H * H + H) * w_item      # W^T + bias buffers
                   + 2 * tm * H * x_item              # double-buffered x tile
                   + 2 * tm * H * out_item)           # double-buffered out tile
        vmem_limit = max(planned + 8 * _MIB, 32 * _MIB)
        if cap:
            vmem_limit = min(vmem_limit, max(cap - 8 * _MIB, 32 * _MIB))

        inv_kwargs = (dict(pipeline_mode=pl.Buffered(1))
                      if single_buffer_invariants else {})
        return pl.pallas_call(
            _self_output_kernel,
            out_shape=jax.ShapeDtypeStruct((M, H), out_dtype),
            grid_spec=pltpu.PrefetchScalarGridSpec(
                num_scalar_prefetch=0,
                grid=(grid_m,),
                in_specs=[
                    pl.BlockSpec((tm, H), lambda i: (i, 0)),               # token tile (pipelined)
                    pl.BlockSpec((H, H), lambda i: (0, 0), **inv_kwargs),  # W^T (resident)
                    pl.BlockSpec((1, H), lambda i: (0, 0), **inv_kwargs),  # bias (resident)
                ],
                out_specs=pl.BlockSpec((tm, H), lambda i: (i, 0)),
            ),
            compiler_params=pltpu.CompilerParams(
                dimension_semantics=("parallel",),     # token axis -> megacore shard on v7x
                vmem_limit_bytes=int(vmem_limit),
            ),
        )

    try:
        out = build(True)(x, w_t, b)
    except Exception:
        # Fallback if this jax build rejects single-buffered (Buffered(1)) specs.
        out = build(False)(x, w_t, b)
    return out.reshape(B, S, H)


def _reference(hidden_states, weight, bias):
    return jnp.einsum("bsh,oh->bso", hidden_states, weight) + bias


if __name__ == "__main__":
    key = jax.random.PRNGKey(0)

    # --- Test 1: small ViT-ish shapes (batch=2, seq=8, hidden=32) ---------
    B, S, H = 2, 8, 32
    k_x, k_res, k_w, k_b, key = jax.random.split(key, 5)
    hidden_states = jax.random.normal(k_x, (B, S, H), dtype=jnp.float32)
    input_tensor = jax.random.normal(k_res, (B, S, H), dtype=jnp.float32)
    bound = 1.0 / (H ** 0.5)  # nn.Linear-style init: U(-1/sqrt(H), 1/sqrt(H))
    weight = jax.random.uniform(k_w, (H, H), jnp.float32, -bound, bound)
    bias = jax.random.uniform(k_b, (H,), jnp.float32, -bound, bound)

    out = jax.block_until_ready(vit_self_output(hidden_states, input_tensor, weight, bias))
    ref = _reference(hidden_states, weight, bias)
    assert out.shape == (B, S, H)
    assert jnp.allclose(out, ref, atol=1e-5, rtol=1e-5), "mismatch vs reference (small)"

    # --- Test 2a: tiled path with explicit tm (odd grid, partial last block) ---
    B2, S2, H2 = 2, 640, 256          # M = 1280, tm = 512 -> grid of 3
    k_x2, k_w2, k_b2, key = jax.random.split(key, 4)
    hs2 = jax.random.normal(k_x2, (B2, S2, H2), dtype=jnp.float32)
    bound2 = 1.0 / (H2 ** 0.5)
    w2 = jax.random.uniform(k_w2, (H2, H2), jnp.float32, -bound2, bound2)
    b2 = jax.random.uniform(k_b2, (H2,), jnp.float32, -bound2, bound2)
    ref2 = _reference(hs2, w2, b2)

    out2a = jax.block_until_ready(vit_self_output(hs2, hs2, w2, b2, tm=512))
    assert out2a.shape == (B2, S2, H2)
    assert jnp.allclose(out2a, ref2, atol=1e-4, rtol=1e-4), "mismatch vs reference (tm=512)"

    # --- Test 2b: auto tile selection (even grid, single-buffered W^T) -----
    out2b = jax.block_until_ready(vit_self_output(hs2, hs2, w2, b2))
    assert jnp.allclose(out2b, ref2, atol=1e-4, rtol=1e-4), "mismatch vs reference (auto tm)"

    # --- Test 3: opt-in bf16 compute path (loose tolerance) ---------------
    out3 = jax.block_until_ready(
        vit_self_output(hs2, hs2, w2, b2, compute_dtype=jnp.bfloat16))
    assert jnp.allclose(out3, ref2, atol=1e-1, rtol=1e-1), "mismatch vs reference (bf16)"

    print("KERNEL_OK")
</pallas_src>

<mosaic_0001>
module attributes {stable_mosaic.version = 11 : i64} {
  func.func @_self_output_kernel(%arg0: i32, %arg1: memref<16x32xf32, #tpu.memory_space<vmem>>, %arg2: memref<32x32xf32, #tpu.memory_space<vmem>>, %arg3: memref<1x32xf32, #tpu.memory_space<vmem>>, %arg4: memref<16x32xf32, #tpu.memory_space<vmem>>) attributes {dimension_semantics = [#tpu.dimension_semantics<parallel>], iteration_bounds = array<i64: 1>, scalar_prefetch = 0 : i64, scratch_operands = 0 : i64, tpu.core_type = #tpu.core_type<tc>, window_params = [{transform_indices = @transform_0, window_bounds = array<i64: 16, 32>}, {pipeline_mode = #tpu.pipeline_mode<synchronous>, transform_indices = @transform_1, window_bounds = array<i64: 32, 32>}, {pipeline_mode = #tpu.pipeline_mode<synchronous>, transform_indices = @transform_2, window_bounds = array<i64: 1, 32>}, {transform_indices = @transform_3, window_bounds = array<i64: 16, 32>}]} {
    %c0 = arith.constant 0 : index
    %c0_0 = arith.constant 0 : index
    %0 = vector.load %arg1[%c0, %c0_0] : memref<16x32xf32, #tpu.memory_space<vmem>>, vector<16x32xf32>
    %c0_1 = arith.constant 0 : index
    %c0_2 = arith.constant 0 : index
    %1 = vector.load %arg2[%c0_1, %c0_2] : memref<32x32xf32, #tpu.memory_space<vmem>>, vector<32x32xf32>
    %cst = arith.constant dense<0.000000e+00> : vector<16x32xf32>
    %2 = tpu.matmul %0, %1, %cst {dimension_numbers = #tpu.dot_dimension_numbers<[1], [0], [0], [1], [0, 0, 1, 1], [], []>} : vector<16x32xf32>, vector<32x32xf32>, vector<16x32xf32> -> vector<16x32xf32>
    %c0_3 = arith.constant 0 : index
    %c0_4 = arith.constant 0 : index
    %3 = vector.load %arg3[%c0_3, %c0_4] : memref<1x32xf32, #tpu.memory_space<vmem>>, vector<1x32xf32>
    %4 = vector.broadcast %3 : vector<1x32xf32> to vector<16x32xf32>
    %5 = arith.addf %2, %4 : vector<16x32xf32>
    %c0_5 = arith.constant 0 : index
    %c0_6 = arith.constant 0 : index
    %6 = vector.load %arg4[%c0_5, %c0_6] : memref<16x32xf32, #tpu.memory_space<vmem>>, vector<16x32xf32>
    tpu.vector_store %arg4[%c0_5, %c0_6], %5 {strides = array<i32>} : memref<16x32xf32, #tpu.memory_space<vmem>>, vector<16x32xf32>,
    return
  }
  func.func @transform_0(%arg0: i32) -> (i32, i32) {
    %c0_i32 = arith.constant 0 : i32
    %c0_i32_0 = arith.constant 0 : i32
    return %arg0, %c0_i32 : i32, i32
  }
  func.func @transform_1(%arg0: i32) -> (i32, i32) {
    %c0_i32 = arith.constant 0 : i32
    %c0_i32_0 = arith.constant 0 : i32
    %c0_i32_1 = arith.constant 0 : i32
    return %c0_i32, %c0_i32_0 : i32, i32
  }
  func.func @transform_2(%arg0: i32) -> (i32, i32) {
    %c0_i32 = arith.constant 0 : i32
    %c0_i32_0 = arith.constant 0 : i32
    %c0_i32_1 = arith.constant 0 : i32
    return %c0_i32, %c0_i32_0 : i32, i32
  }
  func.func @transform_3(%arg0: i32) -> (i32, i32) {
    %c0_i32 = arith.constant 0 : i32
    %c0_i32_0 = arith.constant 0 : i32
    return %arg0, %c0_i32 : i32, i32
  }
}

module attributes {stable_mosaic.version = 11 : i64} {
  func.func @_self_output_kernel(%arg0: i32, %arg1: memref<16x32xf32, #tpu.memory_space<vmem>>, %arg2: memref<32x32xf32, #tpu.memory_space<vmem>>, %arg3: memref<1x32xf32, #tpu.memory_space<vmem>>, %arg4: memref<16x32xf32, #tpu.memory_space<vmem>>) attributes {dimension_semantics = [#tpu.dimension_semantics<parallel>], iteration_bounds = array<i64: 1>, scalar_prefetch = 0 : i64, scratch_operands = 0 : i64, tpu.core_type = #tpu.core_type<tc>, window_params = [{transform_indices = @transform_0, window_bounds = array<i64: 16, 32>}, {pipeline_mode = #tpu.pipeline_mode<synchronous>, transform_indices = @transform_1, window_bounds = array<i64: 32, 32>}, {pipeline_mode = #tpu.pipeline_mode<synchronous>, transform_indices = @transform_2, window_bounds = array<i64: 1, 32>}, {transform_indices = @transform_3, window_bounds = array<i64: 16, 32>}]} {
    %c0 = arith.constant 0 : index
    %c0_0 = arith.constant 0 : index
    %0 = vector.load %arg1[%c0, %c0_0] : memref<16x32xf32, #tpu.memory_space<vmem>>, vector<16x32xf32>
    %c0_1 = arith.constant 0 : index
    %c0_2 = arith.constant 0 : index
    %1 = vector.load %arg2[%c0_1, %c0_2] : memref<32x32xf32, #tpu.memory_space<vmem>>, vector<32x32xf32>
    %cst = arith.constant dense<0.000000e+00> : vector<16x32xf32>
    %2 = tpu.matmul %0, %1, %cst {dimension_numbers = #tpu.dot_dimension_numbers<[1], [0], [0], [1], [0, 0, 1, 1], [], []>} : vector<16x32xf32>, vector<32x32xf32>, vector<16x32xf32> -> vector<16x32xf32>
    %c0_3 = arith.constant 0 : index
    %c0_4 = arith.constant 0 : index
    %3 = vector.load %arg3[%c0_3, %c0_4] : memref<1x32xf32, #tpu.memory_space<vmem>>, vector<1x32xf32>
    %4 = vector.broadcast %3 : vector<1x32xf32> to vector<16x32xf32>
    %5 = arith.addf %2, %4 : vector<16x32xf32>
    %c0_5 = arith.constant 0 : index
    %c0_6 = arith.constant 0 : index
    %6 = vector.load %arg4[%c0_5, %c0_6] : memref<16x32xf32, #tpu.memory_space<vmem>>, vector<16x32xf32>
    tpu.vector_store %arg4[%c0_5, %c0_6], %5 {strides = array<i32>} : memref<16x32xf32, #tpu.memory_space<vmem>>, vector<16x32xf32>,
    return
  }
  func.func @transform_0(%arg0: i32) -> (i32, i32) {
    %c0_i32 = arith.constant 0 : i32
    %c0_i32_0 = arith.constant 0 : i32
    return %arg0, %c0_i32 : i32, i32
  }
  func.func @transform_1(%arg0: i32) -> (i32, i32) {
    %c0_i32 = arith.constant 0 : i32
    %c0_i32_0 = arith.constant 0 : i32
    %c0_i32_1 = arith.constant 0 : i32
    return %c0_i32, %c0_i32_0 : i32, i32
  }
  func.func @transform_2(%arg0: i32) -> (i32, i32) {
    %c0_i32 = arith.constant 0 : i32
    %c0_i32_0 = arith.constant 0 : i32
    %c0_i32_1 = arith.constant 0 : i32
    return %c0_i32, %c0_i32_0 : i32, i32
  }
  func.func @transform_3(%arg0: i32) -> (i32, i32) {
    %c0_i32 = arith.constant 0 : i32
    %c0_i32_0 = arith.constant 0 : i32
    return %arg0, %c0_i32 : i32, i32
  }
}

</mosaic_0001>

<bundles_post_ra>
// kernel: tpu_custom_call.1
= control target key start
LH: loop header
LB: loop body
LE: loop exit
PB: predicated region body
PF: predicated region fallthrough
CT: control target
= control target key end

     0   :  { %8 = vsyncpa [#allocation3], 0  ;;  %s340_s0 = inlined_call_operand.hbm [shape: f32[16,32], index: 0, kind: input, shape index: {}]   ;;  %s341_s1 = inlined_call_operand.hbm [shape: f32[32,32], index: 1, kind: input, shape index: {}]   ;;  %s342_s2 = inlined_call_operand.vmem [shape: f32[1,32], index: 2, kind: input, shape index: {}]   ;;  %s343_s3 = inlined_call_operand.hbm [shape: f32[16,32], index: 3, kind: output, shape index: {}]  }
   0x1   :  { %9 = vsyncpa [#allocation6], 0 }
   0x2   :  { %10 = vsyncpa [#allocation4], 0  ;;  %s263_s12 = smov [#allocation2]   ;;  %s191_s16 = scalar_lea.hbm %s340_s0, 256 }
   0x3   :  { %s16_s13 = sshll.u32 %s263_s12, 4  ;;  %p192_p0 = scmp.ne.s32.totalorder %s340_s0, %s191_s16  ;;  %s17_s13 = int_to_ptr.vmem [resolvable:$true] %s16_s13 }
   0x4   :  { %p195_p1 = scmp.lt.u32.totalorder %s191_s16, %s340_s0 }
   0x6   :  { %p197_p2 = pnand %p195_p1, %p192_p0 }
   0x8   :  { %200 = shalt.err (!%p197_p2)
}
   0x9   :  { %s201_s21 = scalar_lea.vmem %s17_s13, 256  ;;  %p206_p4 = scmp.lt.s32.totalorder %s17_s13, %s17_s13 }
   0xa   :  { %p202_p3 = scmp.ne.s32.totalorder %s17_s13, %s201_s21  ;;  %p207_p5 = scmp.lt.s32.totalorder %s201_s21, %s201_s21 }
   0xc   :  { %p208_p6 = por %p207_p5, %p206_p4 }
   0xe   :  { %p209_p7 = pnand %p208_p6, %p202_p3 }
  0x10   :  { %212 = shalt.err (!%p209_p7)
}
  0x11   :  { %s264_s22 = smov 128   ;;  %s265_s23 = smov 8  }
  0x12   :  { %22 = dma.hbm_to_vmem [thread:$0]  %s340_s0, 256, %s17_s13, [#allocation3], %s264_s22, %s264_s22, %s265_s23  }
  0x13   :  { %s266_s26 = smov [#allocation5]   ;;  %s213_s30 = scalar_lea.hbm %s341_s1, 512 }
  0x14   :  { %s28_s27 = sshll.u32 %s266_s26, 4  ;;  %p214_p8 = scmp.ne.s32.totalorder %s341_s1, %s213_s30  ;;  %s29_s27 = int_to_ptr.vmem [resolvable:$true] %s28_s27 }
  0x15   :  { %p217_p9 = scmp.lt.u32.totalorder %s213_s30, %s341_s1 }
  0x17   :  { %p219_p10 = pnand %p217_p9, %p214_p8 }
  0x19   :  { %222 = shalt.err (!%p219_p10)
}
  0x1a   :  { %s223_s8 = scalar_lea.vmem %s29_s27, 512  ;;  %p228_p12 = scmp.lt.s32.totalorder %s29_s27, %s29_s27 }
  0x1b   :  { %p224_p11 = scmp.ne.s32.totalorder %s29_s27, %s223_s8  ;;  %p229_p13 = scmp.lt.s32.totalorder %s223_s8, %s223_s8 }
  0x1d   :  { %p230_p0 = por %p229_p13, %p228_p12 }
  0x1f   :  { %p231_p1 = pnand %p230_p0, %p224_p11 }
  0x21   :  { %234 = shalt.err (!%p231_p1)
}
  0x22   :  { %34 = dma.hbm_to_vmem [thread:$0]  %s341_s1, 512, %s29_s27, [#allocation6], %s264_s22, %s264_s22, %s265_s23  }
  0x23   :  { %257 = dma.done.wait [#allocation3], 256  }
  0x24   :  { %258 = vsyncadd [#allocation3], 4294967040 }
  0x25   :  { %259 = dma.done.wait [#allocation6], 512  }
  0x26   :  { %260 = vsyncadd [#allocation6], 4294966784  ;;  %vm56_vm0 = vcmask 261120   ;;  %v45_v0 = vld [vmem:[#allocation5] sm:$0xff]  ;;  %v46_v1 = vld [vmem:[#allocation5 + $0x8] sm:$0xff]  ;;  %s267_s11 = smov [#allocation7]  }
  0x27   :  { %v47_v2 = vld [vmem:[#allocation5 + $0x10] sm:$0xff]  ;;  %v178_v3 = vpack.c.bf16 %v46_v1, %v45_v0  ;;  %v48_v4 = vld [vmem:[#allocation5 + $0x18] sm:$0xff]  ;;  %s145_s12 = sshll.u32 %s267_s11, 4  ;;  %s146_s12 = int_to_ptr.vmem [resolvable:$true] %s145_s12 }
  0x28   :  { %v43_v5 = vld [vmem:[#allocation2] sm:$0xff]  ;;  %v182_v6 = vpack.c.bf16 %v48_v4, %v47_v2  ;;  %v44_v7 = vld [vmem:[#allocation2 + $0x8] sm:$0xff]  ;;  %s235_s13 = scalar_lea.vmem %s146_s12, 256  ;;  %p240_p3 = scmp.lt.s32.totalorder %s146_s12, %s146_s12 }
  0x29   :  { %175 = vmatprep.mubr.msk.f32.mxu0 %vm56_vm0, %v43_v5  ;;  %179 = vmatprep.subr.bf16.mxu0 %v178_v3  ;;  %v158_v8 = vld [vmem:[%s342_s2] ss:$0 sm:$0xff]  ;;  %p236_p2 = scmp.ne.s32.totalorder %s146_s12, %s235_s13  ;;  %p241_p4 = scmp.lt.s32.totalorder %s235_s13, %s235_s13 }
  0x2a   :  { %181 = vmatpush3.bf16.msra.mxu0 %v178_v3 }
  0x2b   :  { %183 = vmatprep.subr.bf16.mxu0 %v182_v6  ;;  %p242_p5 = por %p241_p4, %p240_p3 }
  0x2d   :  { %p243_p6 = pnand %p242_p5, %p236_p2 }
  0x2e   :  { %185 = vmatpush3.bf16.msra.mxu0 %v182_v6 }
  0x31   :  { %176 = vmatmul.mubr.msk.f32.vlgmr.msra.gmra.mrb[0].mxu0 %vm56_vm0, %v44_v7 }
 0x104   :  { %v177_v9 = vpop.f32.mrb[0].mxu0 }
 0x105   :  { %v135_v10 = vadd.f32 %v177_v9, %v158_v8  ;;  %v129_v11 = vpop.f32.mrb[1].mxu0 }
 0x106   :  { %v130_v12 = vadd.f32 %v158_v8, %v129_v11 }
 0x107   :  { %139 = vst.msk [vmem:[#allocation7 + $0x8] sm:$0xff] %vm56_vm0, %v135_v10 }
 0x108   :  { %138 = vst.msk [vmem:[#allocation7] sm:$0xff] %vm56_vm0, %v130_v12 }
 0x109   :  { %246 = shalt.err (!%p243_p6)
}
 0x10a   :  { %s247_s15 = scalar_lea.hbm %s343_s3, 256 }
 0x10b   :  { %p248_p7 = scmp.ne.s32.totalorder %s343_s3, %s247_s15  ;;  %p251_p8 = scmp.lt.u32.totalorder %s247_s15, %s343_s3 }
 0x10d   :  { %p253_p9 = pnand %p251_p8, %p248_p7 }
 0x10f   :  { %256 = shalt.err (!%p253_p9)
}
 0x110   :  { %151 = dma.vmem_to_hbm [thread:$0]  %s146_s12, 256, %s343_s3, [#allocation4], %s264_s22, %s264_s22, %s265_s23  }
 0x111   :  { %261 = dma.done.wait [#allocation4], 256  }
 0x112   :  { %262 = vsyncadd [#allocation4], 4294967040 }
 0x113   :  { %155 = vsyncpa [#allocation3], 1 }
 0x114   :  { %156 = vsyncpa [#allocation6], 1 }
 0x115   :  { %157 = vsyncpa [#allocation4], 1 }

// kernel: tpu_custom_call.1
= control target key start
LH: loop header
LB: loop body
LE: loop exit
PB: predicated region body
PF: predicated region fallthrough
CT: control target
= control target key end

     0   :  { %8 = vsyncpa [#allocation3], 0  ;;  %s340_s0 = inlined_call_operand.hbm [shape: f32[16,32], index: 0, kind: input, shape index: {}]   ;;  %s341_s1 = inlined_call_operand.hbm [shape: f32[32,32], index: 1, kind: input, shape index: {}]   ;;  %s342_s2 = inlined_call_operand.vmem [shape: f32[1,32], index: 2, kind: input, shape index: {}]   ;;  %s343_s3 = inlined_call_operand.hbm [shape: f32[16,32], index: 3, kind: output, shape index: {}]  }
   0x1   :  { %9 = vsyncpa [#allocation6], 0 }
   0x2   :  { %10 = vsyncpa [#allocation4], 0  ;;  %s263_s12 = smov [#allocation2]   ;;  %s191_s16 = scalar_lea.hbm %s340_s0, 256 }
   0x3   :  { %s16_s13 = sshll.u32 %s263_s12, 4  ;;  %p192_p0 = scmp.ne.s32.totalorder %s340_s0, %s191_s16  ;;  %s17_s13 = int_to_ptr.vmem [resolvable:$true] %s16_s13 }
   0x4   :  { %p195_p1 = scmp.lt.u32.totalorder %s191_s16, %s340_s0 }
   0x6   :  { %p197_p2 = pnand %p195_p1, %p192_p0 }
   0x8   :  { %200 = shalt.err (!%p197_p2)
}
   0x9   :  { %s201_s21 = scalar_lea.vmem %s17_s13, 256  ;;  %p206_p4 = scmp.lt.s32.totalorder %s17_s13, %s17_s13 }
   0xa   :  { %p202_p3 = scmp.ne.s32.totalorder %s17_s13, %s201_s21  ;;  %p207_p5 = scmp.lt.s32.totalorder %s201_s21, %s201_s21 }
   0xc   :  { %p208_p6 = por %p207_p5, %p206_p4 }
   0xe   :  { %p209_p7 = pnand %p208_p6, %p202_p3 }
  0x10   :  { %212 = shalt.err (!%p209_p7)
}
  0x11   :  { %s264_s22 = smov 128   ;;  %s265_s23 = smov 8  }
  0x12   :  { %22 = dma.hbm_to_vmem [thread:$0]  %s340_s0, 256, %s17_s13, [#allocation3], %s264_s22, %s264_s22, %s265_s23  }
  0x13   :  { %s266_s26 = smov [#allocation5]   ;;  %s213_s30 = scalar_lea.hbm %s341_s1, 512 }
  0x14   :  { %s28_s27 = sshll.u32 %s266_s26, 4  ;;  %p214_p8 = scmp.ne.s32.totalorder %s341_s1, %s213_s30  ;;  %s29_s27 = int_to_ptr.vmem [resolvable:$true] %s28_s27 }
  0x15   :  { %p217_p9 = scmp.lt.u32.totalorder %s213_s30, %s341_s1 }
  0x17   :  { %p219_p10 = pnand %p217_p9, %p214_p8 }
  0x19   :  { %222 = shalt.err (!%p219_p10)
}
  0x1a   :  { %s223_s8 = scalar_lea.vmem %s29_s27, 512  ;;  %p228_p12 = scmp.lt.s32.totalorder %s29_s27, %s29_s27 }
  0x1b   :  { %p224_p11 = scmp.ne.s32.totalorder %s29_s27, %s223_s8  ;;  %p229_p13 = scmp.lt.s32.totalorder %s223_s8, %s223_s8 }
  0x1d   :  { %p230_p0 = por %p229_p13, %p228_p12 }
  0x1f   :  { %p231_p1 = pnand %p230_p0, %p224_p11 }
  0x21   :  { %234 = shalt.err (!%p231_p1)
}
  0x22   :  { %34 = dma.hbm_to_vmem [thread:$0]  %s341_s1, 512, %s29_s27, [#allocation6], %s264_s22, %s264_s22, %s265_s23  }
  0x23   :  { %257 = dma.done.wait [#allocation3], 256  }
  0x24   :  { %258 = vsyncadd [#allocation3], 4294967040 }
  0x25   :  { %259 = dma.done.wait [#allocation6], 512  }
  0x26   :  { %260 = vsyncadd [#allocation6], 4294966784  ;;  %vm56_vm0 = vcmask 261120   ;;  %v45_v0 = vld [vmem:[#allocation5] sm:$0xff]  ;;  %v46_v1 = vld [vmem:[#allocation5 + $0x8] sm:$0xff]  ;;  %s267_s11 = smov [#allocation7]  }
  0x27   :  { %v47_v2 = vld [vmem:[#allocation5 + $0x10] sm:$0xff]  ;;  %v178_v3 = vpack.c.bf16 %v46_v1, %v45_v0  ;;  %v48_v4 = vld [vmem:[#allocation5 + $0x18] sm:$0xff]  ;;  %s145_s12 = sshll.u32 %s267_s11, 4  ;;  %s146_s12 = int_to_ptr.vmem [resolvable:$true] %s145_s12 }
  0x28   :  { %v43_v5 = vld [vmem:[#allocation2] sm:$0xff]  ;;  %v182_v6 = vpack.c.bf16 %v48_v4, %v47_v2  ;;  %v44_v7 = vld [vmem:[#allocation2 + $0x8] sm:$0xff]  ;;  %s235_s13 = scalar_lea.vmem %s146_s12, 256  ;;  %p240_p3 = scmp.lt.s32.totalorder %s146_s12, %s146_s12 }
  0x29   :  { %175 = vmatprep.mubr.msk.f32.mxu0 %vm56_vm0, %v43_v5  ;;  %179 = vmatprep.subr.bf16.mxu0 %v178_v3  ;;  %v158_v8 = vld [vmem:[%s342_s2] ss:$0 sm:$0xff]  ;;  %p236_p2 = scmp.ne.s32.totalorder %s146_s12, %s235_s13  ;;  %p241_p4 = scmp.lt.s32.totalorder %s235_s13, %s235_s13 }
  0x2a   :  { %181 = vmatpush3.bf16.msra.mxu0 %v178_v3 }
  0x2b   :  { %183 = vmatprep.subr.bf16.mxu0 %v182_v6  ;;  %p242_p5 = por %p241_p4, %p240_p3 }
  0x2d   :  { %p243_p6 = pnand %p242_p5, %p236_p2 }
  0x2e   :  { %185 = vmatpush3.bf16.msra.mxu0 %v182_v6 }
  0x31   :  { %176 = vmatmul.mubr.msk.f32.vlgmr.msra.gmra.mrb[0].mxu0 %vm56_vm0, %v44_v7 }
 0x104   :  { %v177_v9 = vpop.f32.mrb[0].mxu0 }
 0x105   :  { %v135_v10 = vadd.f32 %v177_v9, %v158_v8  ;;  %v129_v11 = vpop.f32.mrb[1].mxu0 }
 0x106   :  { %v130_v12 = vadd.f32 %v158_v8, %v129_v11 }
 0x107   :  { %139 = vst.msk [vmem:[#allocation7 + $0x8] sm:$0xff] %vm56_vm0, %v135_v10 }
 0x108   :  { %138 = vst.msk [vmem:[#allocation7] sm:$0xff] %vm56_vm0, %v130_v12 }
 0x109   :  { %246 = shalt.err (!%p243_p6)
}
 0x10a   :  { %s247_s15 = scalar_lea.hbm %s343_s3, 256 }
 0x10b   :  { %p248_p7 = scmp.ne.s32.totalorder %s343_s3, %s247_s15  ;;  %p251_p8 = scmp.lt.u32.totalorder %s247_s15, %s343_s3 }
 0x10d   :  { %p253_p9 = pnand %p251_p8, %p248_p7 }
 0x10f   :  { %256 = shalt.err (!%p253_p9)
}
 0x110   :  { %151 = dma.vmem_to_hbm [thread:$0]  %s146_s12, 256, %s343_s3, [#allocation4], %s264_s22, %s264_s22, %s265_s23  }
 0x111   :  { %261 = dma.done.wait [#allocation4], 256  }
 0x112   :  { %262 = vsyncadd [#allocation4], 4294967040 }
 0x113   :  { %155 = vsyncpa [#allocation3], 1 }
 0x114   :  { %156 = vsyncpa [#allocation6], 1 }
 0x115   :  { %157 = vsyncpa [#allocation4], 1 }

</bundles_post_ra>
